<compile_context>
chip_gen: v6e
topology: v6e:2x2x1
jax: 0.10.0
libtpu: 0.0.40
codegen_flags: <defaults>
</compile_context>

<pallas_src>
import functools

import jax
import jax.numpy as jnp
from jax.experimental import pallas as pl
from jax.experimental.pallas import tpu as pltpu


def _round_up(x, m):
    return ((x + m - 1) // m) * m


# ----------------------------------------------------------------------------
# Pallas kernels: fused Linear(H -> V) + LogSoftmax(dim=-1), two-pass
# ----------------------------------------------------------------------------
def _mlm_lse_kernel(x_ref, w_ref, b_ref, lse_ref, m_sc, l_sc):
    # x_ref  : (tile_m, H)   bf16
    # w_ref  : (H, tile_n)   bf16   (j-th vocab tile)
    # b_ref  : (1, tile_n)   f32    (padded cols = -1e30 -> exp underflows to 0)
    # lse_ref: (tile_m, 1)   f32    resident across the vocab axis
    j = pl.program_id(1)

    @pl.when(j == 0)
    def _():
        m_sc[...] = jnp.full_like(m_sc, -jnp.inf)
        l_sc[...] = jnp.zeros_like(l_sc)

    logits = jnp.dot(x_ref[...], w_ref[...],
                     preferred_element_type=jnp.float32) + b_ref[...]

    m_prev = m_sc[...]
    m_new = jnp.maximum(m_prev, jnp.max(logits, axis=-1, keepdims=True))
    l_sc[...] = (l_sc[...] * jnp.exp(m_prev - m_new)
                 + jnp.sum(jnp.exp(logits - m_new), axis=-1, keepdims=True))
    m_sc[...] = m_new

    @pl.when(j == pl.num_programs(1) - 1)
    def _():
        lse_ref[...] = m_sc[...] + jnp.log(l_sc[...])


def _mlm_logprob_kernel(x_ref, w_ref, b_ref, lse_ref, o_ref):
    # Recompute the logits tile and write normalized log-probs once,
    # lane-dense, to its (i, j) output block.
    logits = jnp.dot(x_ref[...], w_ref[...],
                     preferred_element_type=jnp.float32) + b_ref[...]
    o_ref[...] = logits - lse_ref[...]


def prepare_mlm_head(w, b, *, tile_n=1024):
    """One-time pad + bf16 cast of the MLM weight/bias (hoisted out of forward)."""
    H, V = w.shape
    tile_n = min(tile_n, _round_up(V, 128))
    Vp = _round_up(V, tile_n)
    w_p = jnp.zeros((H, Vp), jnp.bfloat16).at[:, :V].set(w.astype(jnp.bfloat16))
    # Padded vocab columns get a very negative bias so they never contribute
    # to the max / sum-exp (exp underflows to exactly 0).
    b_p = jnp.full((1, Vp), -1e30, jnp.float32).at[0, :V].set(
        b.astype(jnp.float32))
    return w_p, b_p


def linear_logsoftmax(x2d, w_p, b_p, vocab_size, *, tile_m=512, tile_n=1024):
    """x2d: (N, H) f32, w_p: (H, Vp) bf16, b_p: (1, Vp) f32 -> (N, V) f32 log-probs."""
    N, H = x2d.shape
    Vp = w_p.shape[1]
    V = vocab_size

    # Vocab tile: lane-dense; Vp was built as a multiple of
    # min(1024, round_up(V, 128)), so min(tile_n, Vp) always divides Vp.
    tile_n = min(tile_n, Vp)
    assert Vp % tile_n == 0

    # Row tile: multiple of 16 (bf16 sublane packing); shrink for tiny N, and
    # halve when a single block would serialize the 'parallel' row axis
    # (v7x has 2 TensorCores).
    tile_m = min(tile_m, _round_up(N, 16))
    if tile_m > 16 and _round_up(N, tile_m) // tile_m == 1:
        half = _round_up(tile_m // 2, 16)
        if _round_up(N, half) // half >= 2:
            tile_m = half
    Np = _round_up(N, tile_m)

    x_bf = x2d.astype(jnp.bfloat16)
    if Np != N:
        x_bf = jnp.zeros((Np, H), jnp.bfloat16).at[:N].set(x_bf)

    grid = (Np // tile_m, Vp // tile_n)

    # Per-step VMEM: double-buffered x / W / b tiles + the (tile_m, tile_n) f32
    # output tile (pass 2) + tiny lse buffers.  ~10 MB at the defaults, which
    # fits every generation (v7x: 64 MiB physical, 32 MiB scoped default).
    footprint = (2 * tile_m * H * 2 + 2 * H * tile_n * 2 + 2 * tile_n * 4
                 + 2 * tile_m * tile_n * 4 + 6 * tile_m * 4)
    vmem_limit = int(min(max(2 * footprint, 32 * 1024 * 1024),
                         48 * 1024 * 1024))

    # ---- pass 1: per-row log-sum-exp over the (padded) vocab ----
    lse = pl.pallas_call(
        _mlm_lse_kernel,
        out_shape=jax.ShapeDtypeStruct((Np, 1), jnp.float32),
        grid_spec=pltpu.PrefetchScalarGridSpec(
            num_scalar_prefetch=0,
            grid=grid,
            in_specs=[
                pl.BlockSpec((tile_m, H), lambda i, j: (i, 0)),
                pl.BlockSpec((H, tile_n), lambda i, j: (0, j)),
                pl.BlockSpec((1, tile_n), lambda i, j: (0, j)),
            ],
            out_specs=pl.BlockSpec((tile_m, 1), lambda i, j: (i, 0)),
            scratch_shapes=[pltpu.VMEM((tile_m, 1), jnp.float32),
                            pltpu.VMEM((tile_m, 1), jnp.float32)],
        ),
        compiler_params=pltpu.CompilerParams(
            dimension_semantics=("parallel", "arbitrary"),
            vmem_limit_bytes=vmem_limit),
    )(x_bf, w_p, b_p)

    # ---- pass 2: recompute logits, write lane-dense normalized blocks ----
    out = pl.pallas_call(
        _mlm_logprob_kernel,
        out_shape=jax.ShapeDtypeStruct((Np, Vp), jnp.float32),
        grid_spec=pltpu.PrefetchScalarGridSpec(
            num_scalar_prefetch=0,
            grid=grid,
            in_specs=[
                pl.BlockSpec((tile_m, H), lambda i, j: (i, 0)),
                pl.BlockSpec((H, tile_n), lambda i, j: (0, j)),
                pl.BlockSpec((1, tile_n), lambda i, j: (0, j)),
                pl.BlockSpec((tile_m, 1), lambda i, j: (i, 0)),
            ],
            out_specs=pl.BlockSpec((tile_m, tile_n), lambda i, j: (i, j)),
        ),
        compiler_params=pltpu.CompilerParams(
            dimension_semantics=("parallel", "parallel"),
            vmem_limit_bytes=vmem_limit),
    )(x_bf, w_p, b_p, lse)

    if Np == N and Vp == V:
        return out
    return out[:N, :V]


# ----------------------------------------------------------------------------
# BERT encoder (plain-JAX glue matching the reference implementation,
# bf16 MXU operands with f32 accumulation)
# ----------------------------------------------------------------------------
def _gelu(x):
    return 0.5 * x * (1.0 + jnp.tanh(
        jnp.sqrt(2.0 / jnp.pi) * (x + 0.044715 * jnp.power(x, 3))))


def _layer_norm(x, a2, b2, eps=1e-6):
    # NOTE: matches the codertimo reference (unbiased std, eps added to std),
    # which intentionally differs from torch.nn.LayerNorm.
    mean = jnp.mean(x, axis=-1, keepdims=True)
    std = jnp.std(x, axis=-1, keepdims=True, ddof=1)
    return a2 * (x - mean) / (std + eps) + b2


def _sinusoidal_pe(seq_len, d_model):
    pos = jnp.arange(seq_len, dtype=jnp.float32)[:, None]
    i = jnp.arange(0, d_model, 2, dtype=jnp.float32)
    div = jnp.exp(i * (-jnp.log(10000.0) / d_model))
    pe = jnp.zeros((seq_len, d_model), jnp.float32)
    pe = pe.at[:, 0::2].set(jnp.sin(pos * div))
    pe = pe.at[:, 1::2].set(jnp.cos(pos * div))
    return pe


def _bf16_einsum(eq, a, b):
    # bf16 MXU operands, f32 accumulation.
    return jnp.einsum(eq, a.astype(jnp.bfloat16), b.astype(jnp.bfloat16),
                      preferred_element_type=jnp.float32)


def _multi_head_attention(x, mask, p, n_heads):
    B, S, H = x.shape
    dk = H // n_heads

    def proj(w, b):
        y = _bf16_einsum("bsh,hd->bsd", x, w) + b
        return y.reshape(B, S, n_heads, dk).transpose(0, 2, 1, 3)  # (B,h,S,dk)

    q = proj(p["wq"], p["bq"])
    k = proj(p["wk"], p["bk"])
    v = proj(p["wv"], p["bv"])

    scores = _bf16_einsum("bhqd,bhkd->bhqk", q, k) / jnp.sqrt(float(dk))
    scores = jnp.where(mask == 0, -1e9, scores)
    attn = jax.nn.softmax(scores, axis=-1)
    ctx = _bf16_einsum("bhqk,bhkd->bhqd", attn, v)
    ctx = ctx.transpose(0, 2, 1, 3).reshape(B, S, H)
    return _bf16_einsum("bsh,hd->bsd", ctx, p["wo"]) + p["bo"]


def _feed_forward(x, p):
    h = _gelu(_bf16_einsum("bsh,hf->bsf", x, p["w1"]) + p["b1"])
    return _bf16_einsum("bsf,fh->bsh", h, p["w2"]) + p["b2"]


def bert_encoder(params, tokens, segment_label, n_heads):
    B, S = tokens.shape
    # attention mask: (B, 1, S, S), 1 where key token id > 0
    mask = (tokens > 0)[:, None, None, :].astype(jnp.int32)
    mask = jnp.broadcast_to(mask, (B, 1, S, S))

    x = (params["tok_emb"][tokens]
         + _sinusoidal_pe(S, params["tok_emb"].shape[1])[None, :, :]
         + params["seg_emb"][segment_label])

    # TODO(synk): for S >= 512 move attention to a flash-attention Pallas kernel.
    for lp in params["layers"]:
        # pre-norm sublayer connections (SublayerConnection in reference repo)
        x = x + _multi_head_attention(
            _layer_norm(x, lp["ln1_a"], lp["ln1_b"]), mask, lp["attn"], n_heads)
        x = x + _feed_forward(_layer_norm(x, lp["ln2_a"], lp["ln2_b"]), lp["ff"])
    return x


# ----------------------------------------------------------------------------
# BERTLM forward  (NSP head in plain JAX, MLM head in the Pallas kernels)
# ----------------------------------------------------------------------------
def bertlm_forward(params, tokens, segment_label, *, n_heads, vocab_size):
    x = bert_encoder(params["bert"], tokens, segment_label, n_heads)  # (B, S, H)
    B, S, H = x.shape

    # NextSentencePrediction: log_softmax(linear(x[:, 0])) -> (B, 2).
    nsp = jax.nn.log_softmax(
        x[:, 0, :] @ params["nsp_w"] + params["nsp_b"], axis=-1)

    # MaskedLanguageModel: log_softmax(linear(x)) -> (B, S, V), fused Pallas.
    mlm = linear_logsoftmax(x.reshape(B * S, H), params["mlm_w_p"],
                            params["mlm_b_p"], vocab_size)
    return nsp, mlm.reshape(B, S, vocab_size)


# ----------------------------------------------------------------------------
# Deterministic parameter construction
# ----------------------------------------------------------------------------
def make_params(key, vocab_size, hidden, n_layers, ff_hidden):
    ks = iter(jax.random.split(key, 8 + 16 * n_layers))

    def w(shape, scale=0.02):
        return (scale * jax.random.normal(next(ks), shape)).astype(jnp.float32)

    tok_emb = w((vocab_size, hidden)).at[0].set(0.0)   # padding_idx=0
    seg_emb = w((3, hidden)).at[0].set(0.0)            # padding_idx=0

    layers = []
    for _ in range(n_layers):
        layers.append(dict(
            attn=dict(wq=w((hidden, hidden)), bq=jnp.zeros((hidden,), jnp.float32),
                      wk=w((hidden, hidden)), bk=jnp.zeros((hidden,), jnp.float32),
                      wv=w((hidden, hidden)), bv=jnp.zeros((hidden,), jnp.float32),
                      wo=w((hidden, hidden)), bo=jnp.zeros((hidden,), jnp.float32)),
            ff=dict(w1=w((hidden, ff_hidden)), b1=jnp.zeros((ff_hidden,), jnp.float32),
                    w2=w((ff_hidden, hidden)), b2=jnp.zeros((hidden,), jnp.float32)),
            ln1_a=jnp.ones((hidden,), jnp.float32), ln1_b=jnp.zeros((hidden,), jnp.float32),
            ln2_a=jnp.ones((hidden,), jnp.float32), ln2_b=jnp.zeros((hidden,), jnp.float32),
        ))

    # MLM head weights stored pre-padded / pre-cast (hoisted out of forward).
    mlm_w_p, mlm_b_p = prepare_mlm_head(
        w((hidden, vocab_size)), jnp.zeros((vocab_size,), jnp.float32))

    return dict(
        bert=dict(tok_emb=tok_emb, seg_emb=seg_emb, layers=layers),
        nsp_w=w((hidden, 2)), nsp_b=jnp.zeros((2,), jnp.float32),
        mlm_w_p=mlm_w_p, mlm_b_p=mlm_b_p,
    )


if __name__ == "__main__":
    B, S, H, V = 2, 8, 32, 64
    N_LAYERS, N_HEADS, FF = 2, 4, 128

    key = jax.random.PRNGKey(0)
    kp, kt, ksg = jax.random.split(key, 3)

    params = make_params(kp, V, H, N_LAYERS, FF)
    tokens = jax.random.randint(kt, (B, S), 0, V, dtype=jnp.int32)
    segment_label = jax.random.randint(ksg, (B, S), 1, 3, dtype=jnp.int32)

    fwd = jax.jit(functools.partial(bertlm_forward,
                                    n_heads=N_HEADS, vocab_size=V))
    nsp, mlm = fwd(params, tokens, segment_label)
    jax.block_until_ready((nsp, mlm))

    assert nsp.shape == (B, 2) and mlm.shape == (B, S, V)
    # log-softmax rows must sum to ~1 in prob space
    assert jnp.allclose(jnp.exp(nsp).sum(-1), 1.0, atol=1e-4)
    assert jnp.allclose(jnp.exp(mlm).sum(-1), 1.0, atol=1e-4)
    print("KERNEL_OK")
</pallas_src>

<mosaic_0001>
module attributes {stable_mosaic.version = 11 : i64} {
  func.func @_mlm_logprob_kernel(%arg0: i32, %arg1: i32, %arg2: memref<16x32xbf16, #tpu.memory_space<vmem>>, %arg3: memref<32x128xbf16, #tpu.memory_space<vmem>>, %arg4: memref<1x128xf32, #tpu.memory_space<vmem>>, %arg5: memref<16x1xf32, #tpu.memory_space<vmem>>, %arg6: memref<16x128xf32, #tpu.memory_space<vmem>>) attributes {dimension_semantics = [#tpu.dimension_semantics<parallel>, #tpu.dimension_semantics<parallel>], iteration_bounds = array<i64: 1, 1>, scalar_prefetch = 0 : i64, scratch_operands = 0 : i64, tpu.core_type = #tpu.core_type<tc>, window_params = [{transform_indices = @transform_0, window_bounds = array<i64: 16, 32>}, {transform_indices = @transform_1, window_bounds = array<i64: 32, 128>}, {transform_indices = @transform_2, window_bounds = array<i64: 1, 128>}, {transform_indices = @transform_3, window_bounds = array<i64: 16, 1>}, {transform_indices = @transform_4, window_bounds = array<i64: 16, 128>}]} {
    %c0 = arith.constant 0 : index
    %c0_0 = arith.constant 0 : index
    %0 = vector.load %arg2[%c0, %c0_0] : memref<16x32xbf16, #tpu.memory_space<vmem>>, vector<16x32xbf16>
    %c0_1 = arith.constant 0 : index
    %c0_2 = arith.constant 0 : index
    %1 = vector.load %arg3[%c0_1, %c0_2] : memref<32x128xbf16, #tpu.memory_space<vmem>>, vector<32x128xbf16>
    %cst = arith.constant dense<0.000000e+00> : vector<16x128xf32>
    %2 = tpu.matmul %0, %1, %cst {dimension_numbers = #tpu.dot_dimension_numbers<[1], [0], [0], [1], [0, 0, 1, 1], [], []>} : vector<16x32xbf16>, vector<32x128xbf16>, vector<16x128xf32> -> vector<16x128xf32>
    %c0_3 = arith.constant 0 : index
    %c0_4 = arith.constant 0 : index
    %3 = vector.load %arg4[%c0_3, %c0_4] : memref<1x128xf32, #tpu.memory_space<vmem>>, vector<1x128xf32>
    %4 = vector.broadcast %3 : vector<1x128xf32> to vector<16x128xf32>
    %5 = arith.addf %2, %4 : vector<16x128xf32>
    %c0_5 = arith.constant 0 : index
    %c0_6 = arith.constant 0 : index
    %6 = vector.load %arg5[%c0_5, %c0_6] : memref<16x1xf32, #tpu.memory_space<vmem>>, vector<16x1xf32>
    %7 = vector.broadcast %6 : vector<16x1xf32> to vector<16x128xf32>
    %8 = arith.subf %5, %7 : vector<16x128xf32>
    %c0_7 = arith.constant 0 : index
    %c0_8 = arith.constant 0 : index
    %9 = vector.load %arg6[%c0_7, %c0_8] : memref<16x128xf32, #tpu.memory_space<vmem>>, vector<16x128xf32>
    tpu.vector_store %arg6[%c0_7, %c0_8], %8 {strides = array<i32>} : memref<16x128xf32, #tpu.memory_space<vmem>>, vector<16x128xf32>,
    return
  }
  func.func @transform_0(%arg0: i32, %arg1: i32) -> (i32, i32) {
    %c0_i32 = arith.constant 0 : i32
    %c0_i32_0 = arith.constant 0 : i32
    return %arg0, %c0_i32 : i32, i32
  }
  func.func @transform_1(%arg0: i32, %arg1: i32) -> (i32, i32) {
    %c0_i32 = arith.constant 0 : i32
    %c0_i32_0 = arith.constant 0 : i32
    return %c0_i32, %arg1 : i32, i32
  }
  func.func @transform_2(%arg0: i32, %arg1: i32) -> (i32, i32) {
    %c0_i32 = arith.constant 0 : i32
    %c0_i32_0 = arith.constant 0 : i32
    return %c0_i32, %arg1 : i32, i32
  }
  func.func @transform_3(%arg0: i32, %arg1: i32) -> (i32, i32) {
    %c0_i32 = arith.constant 0 : i32
    %c0_i32_0 = arith.constant 0 : i32
    return %arg0, %c0_i32 : i32, i32
  }
  func.func @transform_4(%arg0: i32, %arg1: i32) -> (i32, i32) {
    %c0_i32 = arith.constant 0 : i32
    return %arg0, %arg1 : i32, i32
  }
}

module attributes {stable_mosaic.version = 11 : i64} {
  func.func @_mlm_lse_kernel(%arg0: i32, %arg1: i32, %arg2: memref<16x32xbf16, #tpu.memory_space<vmem>>, %arg3: memref<32x128xbf16, #tpu.memory_space<vmem>>, %arg4: memref<1x128xf32, #tpu.memory_space<vmem>>, %arg5: memref<16x1xf32, #tpu.memory_space<vmem>>, %arg6: memref<16x1xf32, #tpu.memory_space<vmem>>, %arg7: memref<16x1xf32, #tpu.memory_space<vmem>>) attributes {dimension_semantics = [#tpu.dimension_semantics<parallel>, #tpu.dimension_semantics<arbitrary>], iteration_bounds = array<i64: 1, 1>, scalar_prefetch = 0 : i64, scratch_operands = 2 : i64, tpu.core_type = #tpu.core_type<tc>, window_params = [{transform_indices = @transform_0, window_bounds = array<i64: 16, 32>}, {transform_indices = @transform_1, window_bounds = array<i64: 32, 128>}, {transform_indices = @transform_2, window_bounds = array<i64: 1, 128>}, {transform_indices = @transform_3, window_bounds = array<i64: 16, 1>}]} {
    %c0_i32 = arith.constant 0 : i32
    %0 = arith.cmpi eq, %arg1, %c0_i32 : i32
    %1 = arith.extui %0 : i1 to i32
    %c0_i32_0 = arith.constant 0 : i32
    %2 = arith.cmpi ne, %1, %c0_i32_0 : i32
    scf.if %2 {
      %cst_18 = arith.constant 0xFF800000 : f32
      %28 = vector.broadcast %cst_18 : f32 to vector<16x1xf32>
      %c0_19 = arith.constant 0 : index
      %c0_20 = arith.constant 0 : index
      %29 = vector.load %arg6[%c0_19, %c0_20] : memref<16x1xf32, #tpu.memory_space<vmem>>, vector<16x1xf32>
      tpu.vector_store %arg6[%c0_19, %c0_20], %28 {strides = array<i32>} : memref<16x1xf32, #tpu.memory_space<vmem>>, vector<16x1xf32>,
      %cst_21 = arith.constant 0.000000e+00 : f32
      %30 = vector.broadcast %cst_21 : f32 to vector<16x1xf32>
      %c0_22 = arith.constant 0 : index
      %c0_23 = arith.constant 0 : index
      %31 = vector.load %arg7[%c0_22, %c0_23] : memref<16x1xf32, #tpu.memory_space<vmem>>, vector<16x1xf32>
      tpu.vector_store %arg7[%c0_22, %c0_23], %30 {strides = array<i32>} : memref<16x1xf32, #tpu.memory_space<vmem>>, vector<16x1xf32>,
    } else {
    }
    %c0 = arith.constant 0 : index
    %c0_1 = arith.constant 0 : index
    %3 = vector.load %arg2[%c0, %c0_1] : memref<16x32xbf16, #tpu.memory_space<vmem>>, vector<16x32xbf16>
    %c0_2 = arith.constant 0 : index
    %c0_3 = arith.constant 0 : index
    %4 = vector.load %arg3[%c0_2, %c0_3] : memref<32x128xbf16, #tpu.memory_space<vmem>>, vector<32x128xbf16>
    %cst = arith.constant dense<0.000000e+00> : vector<16x128xf32>
    %5 = tpu.matmul %3, %4, %cst {dimension_numbers = #tpu.dot_dimension_numbers<[1], [0], [0], [1], [0, 0, 1, 1], [], []>} : vector<16x32xbf16>, vector<32x128xbf16>, vector<16x128xf32> -> vector<16x128xf32>
    %c0_4 = arith.constant 0 : index
    %c0_5 = arith.constant 0 : index
    %6 = vector.load %arg4[%c0_4, %c0_5] : memref<1x128xf32, #tpu.memory_space<vmem>>, vector<1x128xf32>
    %7 = vector.broadcast %6 : vector<1x128xf32> to vector<16x128xf32>
    %8 = arith.addf %5, %7 : vector<16x128xf32>
    %c0_6 = arith.constant 0 : index
    %c0_7 = arith.constant 0 : index
    %9 = vector.load %arg6[%c0_6, %c0_7] : memref<16x1xf32, #tpu.memory_space<vmem>>, vector<16x1xf32>
    %cst_8 = arith.constant dense<0xFF800000> : vector<16xf32>
    %10 = vector.multi_reduction <maximumf>, %8, %cst_8 [1] : vector<16x128xf32> to vector<16xf32>
    %11 = vector.shape_cast %10 : vector<16xf32> to vector<16x1xf32>
    %12 = arith.maximumf %9, %11 : vector<16x1xf32>
    %c0_9 = arith.constant 0 : index
    %c0_10 = arith.constant 0 : index
    %13 = vector.load %arg7[%c0_9, %c0_10] : memref<16x1xf32, #tpu.memory_space<vmem>>, vector<16x1xf32>
    %14 = arith.subf %9, %12 : vector<16x1xf32>
    %15 = math.exp %14 : vector<16x1xf32>
    %16 = arith.mulf %13, %15 : vector<16x1xf32>
    %17 = vector.broadcast %12 : vector<16x1xf32> to vector<16x128xf32>
    %18 = arith.subf %8, %17 : vector<16x128xf32>
    %19 = math.exp %18 : vector<16x128xf32>
    %cst_11 = arith.constant dense<0.000000e+00> : vector<16xf32>
    %20 = vector.multi_reduction <add>, %19, %cst_11 [1] : vector<16x128xf32> to vector<16xf32>
    %21 = vector.shape_cast %20 : vector<16xf32> to vector<16x1xf32>
    %22 = arith.addf %16, %21 : vector<16x1xf32>
    %c0_12 = arith.constant 0 : index
    %c0_13 = arith.constant 0 : index
    %23 = vector.load %arg7[%c0_12, %c0_13] : memref<16x1xf32, #tpu.memory_space<vmem>>, vector<16x1xf32>
    tpu.vector_store %arg7[%c0_12, %c0_13], %22 {strides = array<i32>} : memref<16x1xf32, #tpu.memory_space<vmem>>, vector<16x1xf32>,
    %c0_14 = arith.constant 0 : index
    %c0_15 = arith.constant 0 : index
    %24 = vector.load %arg6[%c0_14, %c0_15] : memref<16x1xf32, #tpu.memory_space<vmem>>, vector<16x1xf32>
    tpu.vector_store %arg6[%c0_14, %c0_15], %12 {strides = array<i32>} : memref<16x1xf32, #tpu.memory_space<vmem>>, vector<16x1xf32>,
    %c0_i32_16 = arith.constant 0 : i32
    %25 = arith.cmpi eq, %arg1, %c0_i32_16 : i32
    %26 = arith.extui %25 : i1 to i32
    %c0_i32_17 = arith.constant 0 : i32
    %27 = arith.cmpi ne, %26, %c0_i32_17 : i32
    scf.if %27 {
      %c0_18 = arith.constant 0 : index
      %c0_19 = arith.constant 0 : index
      %28 = vector.load %arg6[%c0_18, %c0_19] : memref<16x1xf32, #tpu.memory_space<vmem>>, vector<16x1xf32>
      %c0_20 = arith.constant 0 : index
      %c0_21 = arith.constant 0 : index
      %29 = vector.load %arg7[%c0_20, %c0_21] : memref<16x1xf32, #tpu.memory_space<vmem>>, vector<16x1xf32>
      %30 = math.log %29 : vector<16x1xf32>
      %31 = arith.addf %28, %30 : vector<16x1xf32>
      %c0_22 = arith.constant 0 : index
      %c0_23 = arith.constant 0 : index
      %32 = vector.load %arg5[%c0_22, %c0_23] : memref<16x1xf32, #tpu.memory_space<vmem>>, vector<16x1xf32>
      tpu.vector_store %arg5[%c0_22, %c0_23], %31 {strides = array<i32>} : memref<16x1xf32, #tpu.memory_space<vmem>>, vector<16x1xf32>,
    } else {
    }
    return
  }
  func.func @transform_0(%arg0: i32, %arg1: i32) -> (i32, i32) {
    %c0_i32 = arith.constant 0 : i32
    %c0_i32_0 = arith.constant 0 : i32
    return %arg0, %c0_i32 : i32, i32
  }
  func.func @transform_1(%arg0: i32, %arg1: i32) -> (i32, i32) {
    %c0_i32 = arith.constant 0 : i32
    %c0_i32_0 = arith.constant 0 : i32
    return %c0_i32, %arg1 : i32, i32
  }
  func.func @transform_2(%arg0: i32, %arg1: i32) -> (i32, i32) {
    %c0_i32 = arith.constant 0 : i32
    %c0_i32_0 = arith.constant 0 : i32
    return %c0_i32, %arg1 : i32, i32
  }
  func.func @transform_3(%arg0: i32, %arg1: i32) -> (i32, i32) {
    %c0_i32 = arith.constant 0 : i32
    %c0_i32_0 = arith.constant 0 : i32
    return %arg0, %c0_i32 : i32, i32
  }
}

</mosaic_0001>

<bundles_post_ra>
// kernel: bertlm_forward.2
= control target key start
LH: loop header
LB: loop body
LE: loop exit
PB: predicated region body
PF: predicated region fallthrough
CT: control target
= control target key end

     0   :  { %v200_v0 = vmov 0.0   ;;  %vm201_vm0 = vmmov 0   ;;  %vm54_vm1 = vcmask 261120   ;;  %vm19_vm2 = vcmask 7168   ;;  %s252_s1 = inlined_call_operand.vmem [shape: bf16[32,128], index: 1, kind: input, shape index: {}]   ;;  %s253_s0 = inlined_call_operand.vmem [shape: bf16[16,32], index: 0, kind: input, shape index: {}]   ;;  %s254_s2 = inlined_call_operand.vmem [shape: f32[1,128], index: 2, kind: input, shape index: {}]   ;;  %s255_s3 = inlined_call_operand.vmem [shape: f32[16,1], index: 3, kind: output, shape index: {}]  }
   0x1   :  { %171 = vmatprep.subr.bf16.mxu0 %v200_v0  ;;  %v185_v1 = vld [vmem:[%s252_s1 + $0x8] sm:$0xff]   ;;  %175 = vmatprep.mubr.msk.bf16.mxu0 %vm201_vm0, %v200_v0  ;;  %v186_v2 = vld [vmem:[%s252_s1] sm:$0xff]   ;;  %v202_v4 = vmov -inf   ;;  %22 = vst.msk [vmem:[#allocation3] sm:$0xff] %vm19_vm2, %v200_v0  ;;  %23 = vst.msk [vmem:[#allocation3 + $0x8] sm:$0xff] %vm19_vm2, %v200_v0  ;;  %v203_v12 = vmov 0  }
   0x2   :  { %172 = vmatpush3.bf16.msra.mxu0 %v185_v1  ;;  %v187_v3 = vld [vmem:[%s253_s0] sm:$0xff]   ;;  %20 = vst.msk [vmem:[#allocation2] sm:$0xff] %vm19_vm2, %v202_v4  ;;  %21 = vst.msk [vmem:[#allocation2 + $0x8] sm:$0xff] %vm19_vm2, %v202_v4  ;;  %183 = vset.pattern.permute.xlu1 %v203_v12 }
   0x3   :  { %173 = vmatprep.subr.bf16.mxu0 %v200_v0  ;;  %v163_v5 = vld [vmem:[%s254_s2] ss:$0 sm:$0xff]  ;;  %184 = vset.pattern.permute.xlu0 %v203_v12 }
   0x6   :  { %174 = vmatpush3.bf16.msra.mxu0 %v186_v2 }
   0x8   :  { %v107_v32 = vld [vmem:[#allocation3] sm:$0xff]  ;;  %v108_v36 = vld [vmem:[#allocation3 + $0x8] sm:$0xff] }
   0x9   :  { %176 = vmatmul.mubr.msk.bf16.vlgmr.msra.gmra.mxu0 %vm54_vm1, %v187_v3  ;;  %v99_v13 = vld [vmem:[#allocation2] sm:$0xff]  ;;  %v100_v16 = vld [vmem:[#allocation2 + $0x8] sm:$0xff] }
  0xc9   :  { %v92_v6 = vpop.f32.mrf.mxu0 }
  0xca   :  { %v93_v7 = vadd.f32 %v163_v5, %v92_v6 }
  0xcb   :  { %v177_v8 = vpop.f32.mrf.mxu0 }
  0xcc   :  { %101 = vmax.xlane.f32.xlu0 %v93_v7 }
  0xcd   :  { %v95_v9 = vpop.f32.mrf.mxu0 }
  0xce   :  { %v96_v10 = vadd.f32 %v163_v5, %v95_v9 }
  0xcf   :  { %v178_v11 = vpop.f32.mrf.mxu0 }
  0xd0   :  { %103 = vmax.xlane.f32.xlu0 %v96_v10 }
 0x155   :  { %v102_v14 = vpop.xlane.xlu0 %101 }
 0x156   :  { %v105_v15 = vmax.f32 %v99_v13, %v102_v14 }
 0x158   :  { %v109_v17 = vsub.f32 %v99_v13, %v105_v15  ;;  %142 = vst.msk [vmem:[#allocation2] sm:$0xff] %vm19_vm2, %v105_v15  ;;  %119 = vperm.xlu1 %183, %v105_v15  }
 0x159   :  { %v104_v18 = vpop.xlane.xlu0 %103 }
 0x15a   :  { %v106_v19 = vmax.f32 %v100_v16, %v104_v18  ;;  %v111_v29 = vmul.f32 1.442695, %v109_v17 }
 0x15c   :  { %v110_v20 = vsub.f32 %v100_v16, %v106_v19  ;;  %143 = vst.msk [vmem:[#allocation2 + $0x8] sm:$0xff] %vm19_vm2, %v106_v19  ;;  %124 = vperm.xlu1 %183, %v106_v19  }
 0x15e   :  { %v113_v30 = vmul.f32 1.442695, %v110_v20 }
 0x15f   :  { %v147_v45 = vld [vmem:[#allocation2] sm:$0xff] }
 0x163   :  { %v148_v49 = vld [vmem:[#allocation2 + $0x8] sm:$0xff] }
 0x1d3   :  { %v120_v21 = vpop.permute.xlu1 %119 }
 0x1d4   :  { %v127_v22 = vsub.f32 %v93_v7, %v120_v21 }
 0x1d6   :  { %v129_v23 = vmul.f32 1.442695, %v127_v22 }
 0x1d7   :  { %v125_v24 = vpop.permute.xlu1 %124 }
 0x1d8   :  { %188 = vpow2.f32 %v129_v23  ;;  %v128_v25 = vsub.f32 %v96_v10, %v125_v24 }
 0x1da   :  { %v131_v26 = vmul.f32 1.442695, %v128_v25 }
 0x1dc   :  { %190 = vpow2.f32 %v131_v26 }
 0x1dd   :  { %192 = vpow2.f32 %v111_v29 }
 0x1de   :  { %194 = vpow2.f32 %v113_v30 }
 0x1e5   :  { %v189_v27 = vpop.eup %188 }
 0x1e6   :  { %133 = vadd.xlane.f32.xlu0 %v189_v27 }
 0x1e9   :  { %v191_v28 = vpop.eup %190 }
 0x1ea   :  { %135 = vadd.xlane.f32.xlu1 %v191_v28  ;;  %v193_v31 = vpop.eup %192 }
 0x1eb   :  { %v115_v33 = vmul.f32 %v193_v31, %v107_v32  ;;  %v195_v34 = vpop.eup %194 }
 0x1ec   :  { %v116_v38 = vmul.f32 %v195_v34, %v108_v36 }
 0x26f   :  { %v134_v35 = vpop.xlane.xlu0 %133 }
 0x270   :  { %v137_v37 = vadd.f32 %v134_v35, %v115_v33 }
 0x272   :  { %140 = vst.msk [vmem:[#allocation3] sm:$0xff] %vm19_vm2, %v137_v37 }
 0x273   :  { %v136_v39 = vpop.xlane.xlu1 %135 }
 0x274   :  { %v138_v40 = vadd.f32 %v136_v39, %v116_v38 }
 0x276   :  { %141 = vst.msk [vmem:[#allocation3 + $0x8] sm:$0xff] %vm19_vm2, %v138_v40 }
 0x279   :  { %v149_v41 = vld [vmem:[#allocation3] sm:$0xff] }
 0x27a   :  { %196 = vlog2.f32 %v149_v41 }
 0x27d   :  { %v150_v42 = vld [vmem:[#allocation3 + $0x8] sm:$0xff] }
 0x27e   :  { %198 = vlog2.f32 %v150_v42 }
 0x287   :  { %v197_v43 = vpop.eup %196 }
 0x288   :  { %v152_v44 = vmul.f32 0.6931472, %v197_v43 }
 0x28a   :  { %v155_v46 = vadd.f32 %v152_v44, %v147_v45 }
 0x28b   :  { %v199_v47 = vpop.eup %198 }
 0x28c   :  { %157 = vst.msk [vmem:[%s255_s3] sm:$0xff] %vm19_vm2, %v155_v46  ;;  %v154_v48 = vmul.f32 0.6931472, %v199_v47 }
 0x28e   :  { %v156_v50 = vadd.f32 %v154_v48, %v148_v49 }
 0x290   :  { %158 = vst.msk [vmem:[%s255_s3 + $0x8] sm:$0xff] %vm19_vm2, %v156_v50 }

// kernel: bertlm_forward.3
= control target key start
LH: loop header
LB: loop body
LE: loop exit
PB: predicated region body
PF: predicated region fallthrough
CT: control target
= control target key end

     0   :  { %v136_v0 = vmov 0.0   ;;  %vm137_vm0 = vmmov 0   ;;  %v138_v2 = vmov 0   ;;  %vm48_vm1 = vcmask 261120   ;;  %s188_s1 = inlined_call_operand.vmem [shape: bf16[32,128], index: 1, kind: input, shape index: {}]   ;;  %s189_s3 = inlined_call_operand.vmem [shape: f32[16,1], index: 3, kind: input, shape index: {}]   ;;  %s190_s0 = inlined_call_operand.vmem [shape: bf16[16,32], index: 0, kind: input, shape index: {}]   ;;  %s191_s2 = inlined_call_operand.vmem [shape: f32[1,128], index: 2, kind: input, shape index: {}]   ;;  %s192_s4 = inlined_call_operand.vmem [shape: f32[16,128], index: 4, kind: output, shape index: {}]  }
   0x1   :  { %121 = vmatprep.subr.bf16.mxu0 %v136_v0  ;;  %v133_v1 = vld [vmem:[%s188_s1 + $0x8] sm:$0xff]   ;;  %125 = vmatprep.mubr.msk.bf16.mxu0 %vm137_vm0, %v136_v0  ;;  %v134_v3 = vld [vmem:[%s188_s1] sm:$0xff]  }
   0x2   :  { %132 = vset.pattern.permute.xlu0 %v138_v2  ;;  %122 = vmatpush3.bf16.msra.mxu0 %v133_v1  ;;  %v93_v4 = vld [vmem:[%s189_s3] sm:$0xff]  ;;  %v94_v6 = vld [vmem:[%s189_s3 + $0x8] sm:$0xff] }
   0x3   :  { %123 = vmatprep.subr.bf16.mxu0 %v136_v0  ;;  %97 = vperm.xlu0 %132, %v93_v4   ;;  %v135_v5 = vld [vmem:[%s190_s0] sm:$0xff]  }
   0x4   :  { %v113_v7 = vld [vmem:[%s191_s2] ss:$0 sm:$0xff] }
   0x6   :  { %124 = vmatpush3.bf16.msra.mxu0 %v134_v3 }
   0x7   :  { %102 = vperm.xlu0 %132, %v94_v6  }
   0x9   :  { %126 = vmatmul.mubr.msk.bf16.vlgmr.msra.gmra.mxu0 %vm48_vm1, %v135_v5 }
  0x7e   :  { %v98_v8 = vpop.permute.xlu0 %97 }
  0x82   :  { %v103_v15 = vpop.permute.xlu0 %102 }
  0xc9   :  { %v86_v9 = vpop.f32.mrf.mxu0 }
  0xca   :  { %v87_v10 = vadd.f32 %v113_v7, %v86_v9 }
  0xcb   :  { %v127_v11 = vpop.f32.mrf.mxu0 }
  0xcc   :  { %v105_v12 = vsub.f32 %v87_v10, %v98_v8 }
  0xcd   :  { %v89_v13 = vpop.f32.mrf.mxu0 }
  0xce   :  { %107 = vst [vmem:[%s192_s4] sm:$0xff] %v105_v12  ;;  %v90_v14 = vadd.f32 %v113_v7, %v89_v13 }
  0xcf   :  { %v128_v16 = vpop.f32.mrf.mxu0 }
  0xd0   :  { %v106_v17 = vsub.f32 %v90_v14, %v103_v15 }
  0xd2   :  { %108 = vst [vmem:[%s192_s4 + $0x8] sm:$0xff] %v106_v17 }

</bundles_post_ra>
